<compile_context>
chip_gen: v5e
topology: v5e:2x2
jax: 0.10.0
libtpu: 0.0.40
codegen_flags: <defaults>
</compile_context>

<pallas_src>
import jax
import jax.numpy as jnp
from jax.experimental import pallas as pl
from jax.experimental.pallas import tpu as pltpu


def _round_up(x, m):
    return (x + m - 1) // m * m


def _vmem_cap_bytes():
    """Physical VMEM of this TPU generation, minus ~25% compiler headroom."""
    try:
        phys = int(pltpu.get_tpu_info().vmem_capacity_bytes)
    except Exception:
        phys = 64 * 1024 * 1024  # conservative: v7x per-TensorCore VMEM
    return max(32 * 1024 * 1024, (phys // 4) * 3)


# ------------------------------- kernels ------------------------------------


def _single_tile_kernel(x_ref, w1_ref, b1_ref, w2_ref, b2_ref, o_ref):
    # Whole ff dimension in one tile: no accumulator needed at all.
    h = jnp.dot(x_ref[...].astype(w1_ref.dtype), w1_ref[...],
                preferred_element_type=jnp.float32)
    h = jnp.maximum(h + b1_ref[...].astype(jnp.float32), 0.0)
    y = jnp.dot(h.astype(w2_ref.dtype), w2_ref[...],
                preferred_element_type=jnp.float32)
    o_ref[...] = (y + b2_ref[...].astype(jnp.float32)).astype(o_ref.dtype)


def _reduction_kernel_inplace(x_ref, w1_ref, b1_ref, w2_ref, b2_ref, o_ref):
    # f32 output: the resident output tile *is* the accumulator (no scratch).
    j = pl.program_id(1)

    @pl.when(j == 0)
    def _():
        # Seed with b2 so it is added exactly once.
        o_ref[...] = jnp.broadcast_to(b2_ref[...].astype(jnp.float32),
                                      o_ref.shape)

    h = jnp.dot(x_ref[...].astype(w1_ref.dtype), w1_ref[...],
                preferred_element_type=jnp.float32)
    h = jnp.maximum(h + b1_ref[pl.ds(j, 1), :].astype(jnp.float32), 0.0)
    o_ref[...] += jnp.dot(h.astype(w2_ref.dtype), w2_ref[...],
                          preferred_element_type=jnp.float32)


def _reduction_kernel_scratch(x_ref, w1_ref, b1_ref, w2_ref, b2_ref, o_ref,
                              acc_ref):
    # Non-f32 output: f32 scratch accumulator, b2 add + cast once at finalize.
    j = pl.program_id(1)

    @pl.when(j == 0)
    def _():
        acc_ref[...] = jnp.zeros_like(acc_ref)

    h = jnp.dot(x_ref[...].astype(w1_ref.dtype), w1_ref[...],
                preferred_element_type=jnp.float32)
    h = jnp.maximum(h + b1_ref[pl.ds(j, 1), :].astype(jnp.float32), 0.0)
    acc_ref[...] += jnp.dot(h.astype(w2_ref.dtype), w2_ref[...],
                            preferred_element_type=jnp.float32)

    @pl.when(j == pl.num_programs(1) - 1)
    def _():
        o_ref[...] = (acc_ref[...]
                      + b2_ref[...].astype(jnp.float32)).astype(o_ref.dtype)


# ------------------------------- wrapper ------------------------------------


def positional_feed_forward(x, w1, b1, w2, b2, *, tm=512, tf=512,
                            compute_dtype=None):
    """x: (batch, seq, dim). w1: (dim, ff_dim), b1: (ff_dim,),
       w2: (ff_dim, dim), b2: (dim,).  Returns (batch, seq, dim) in x.dtype."""
    batch, seq, dim = x.shape
    ff_dim = w1.shape[1]
    M = batch * seq
    out_dtype = x.dtype

    # bf16 MXU path: cast the (small, reused) weights once in the wrapper; x
    # itself is cast inside the kernel, so no extra HBM pass over activations.
    if compute_dtype is not None:
        w1 = w1.astype(compute_dtype)
        w2 = w2.astype(compute_dtype)

    x2d = x.reshape(M, dim)

    x_isz = x2d.dtype.itemsize
    w_isz = w1.dtype.itemsize
    o_isz = out_dtype.itemsize
    sub = 16 if x_isz == 2 else 8

    # ---- Row tile: biggest sublane-aligned tile <= tm, but at least two row
    # tiles when M permits (keeps both v7x TensorCores busy).  No jnp.pad: the
    # ragged last row tile is masked by Pallas on writeback.
    if M <= tm:
        tm_eff = _round_up(pl.cdiv(M, 2), sub) if M >= 2 * sub else M
    else:
        tm_eff = max(sub, (tm // sub) * sub)
    tm_eff = min(tm_eff, M)

    # ---- ff tile: whole ff_dim if it fits, else prefer a 128-aligned divisor
    # of ff_dim near tf (no weight padding); fall back to zero-padding weights.
    if ff_dim <= tf:
        tf_eff = ff_dim
    else:
        tf_eff = 0
        hi = (tf // 128) * 128
        lo = max(128, hi // 2)
        for cand in range(hi, lo - 1, -128):
            if ff_dim % cand == 0:
                tf_eff = cand
                break
        if tf_eff == 0:
            tf_eff = max(128, hi)
    F_pad = _round_up(ff_dim, tf_eff)
    num_j = F_pad // tf_eff

    w1p, b1p, w2p = w1, b1, w2
    if F_pad != ff_dim:
        # Zero padding of the ff axis is exact: relu(0 + 0) @ 0 contributes 0.
        w1p = jnp.pad(w1, ((0, 0), (0, F_pad - ff_dim)))
        b1p = jnp.pad(b1, ((0, F_pad - ff_dim),))
        w2p = jnp.pad(w2, ((0, F_pad - ff_dim), (0, 0)))

    use_inplace = (num_j > 1) and (out_dtype == jnp.float32)
    use_scratch = (num_j > 1) and not use_inplace

    # ---- Generation-aware VMEM budget (128 MiB on v5e/v6e, 64 MiB on v7x),
    # with an auto-shrink of tm if the tile working set would not fit.
    cap = _vmem_cap_bytes()

    def _vmem_est(tm_e):
        return (2 * tm_e * dim * x_isz                      # x tile (dbl-buf)
                + 2 * dim * tf_eff * w_isz                  # W1 tile
                + 2 * tf_eff * dim * w_isz                  # W2 tile
                + 2 * (F_pad + dim) * w_isz                 # resident biases
                + 2 * tm_e * dim * o_isz                    # output tile
                + (tm_e * dim * 4 if use_scratch else 0)    # f32 accumulator
                + tm_e * tf_eff * 4)                        # hidden slab

    while _vmem_est(tm_eff) + (4 << 20) > cap and tm_eff > sub:
        tm_eff = max(sub, ((tm_eff // 2) // sub) * sub)

    vmem_limit = int(min(cap, max(32 * 1024 * 1024,
                                  2 * _vmem_est(tm_eff) + (4 << 20))))

    grid_i = pl.cdiv(M, tm_eff)

    if num_j == 1:
        kernel = _single_tile_kernel
        grid = (grid_i,)
        in_specs = [
            pl.BlockSpec((tm_eff, dim), lambda i: (i, 0)),     # x row tile
            pl.BlockSpec((dim, ff_dim), lambda i: (0, 0)),     # W1 (resident)
            pl.BlockSpec((1, ff_dim), lambda i: (0, 0)),       # b1 (resident)
            pl.BlockSpec((ff_dim, dim), lambda i: (0, 0)),     # W2 (resident)
            pl.BlockSpec((1, dim), lambda i: (0, 0)),          # b2 (resident)
        ]
        out_specs = pl.BlockSpec((tm_eff, dim), lambda i: (i, 0))
        scratch_shapes = []
        dim_sem = ("parallel",)
        b1_arg = b1p.reshape(1, ff_dim)
    else:
        kernel = (_reduction_kernel_inplace if use_inplace
                  else _reduction_kernel_scratch)
        grid = (grid_i, num_j)
        in_specs = [
            pl.BlockSpec((tm_eff, dim), lambda i, j: (i, 0)),    # x row tile
            pl.BlockSpec((dim, tf_eff), lambda i, j: (0, j)),    # W1 ff tile
            pl.BlockSpec((num_j, tf_eff), lambda i, j: (0, 0)),  # b1 resident
            pl.BlockSpec((tf_eff, dim), lambda i, j: (j, 0)),    # W2 ff tile
            pl.BlockSpec((1, dim), lambda i, j: (0, 0)),         # b2 resident
        ]
        out_specs = pl.BlockSpec((tm_eff, dim), lambda i, j: (i, 0))
        scratch_shapes = ([pltpu.VMEM((tm_eff, dim), jnp.float32)]
                          if use_scratch else [])
        dim_sem = ("parallel", "arbitrary")
        b1_arg = b1p.reshape(num_j, tf_eff)

    out2d = pl.pallas_call(
        kernel,
        out_shape=jax.ShapeDtypeStruct((M, dim), out_dtype),
        grid_spec=pltpu.PrefetchScalarGridSpec(
            num_scalar_prefetch=0,
            grid=grid,
            in_specs=in_specs,
            out_specs=out_specs,
            scratch_shapes=scratch_shapes,
        ),
        compiler_params=pltpu.CompilerParams(
            dimension_semantics=dim_sem,
            vmem_limit_bytes=vmem_limit,
        ),
    )(x2d, w1p, b1_arg, w2p, b2.reshape(1, dim))

    return out2d.reshape(batch, seq, dim)


# ------------------------------ test helpers --------------------------------


def init_params(key, dim, ff_dim, dtype=jnp.float32):
    # Mirrors nn.Linear's uniform(-1/sqrt(fan_in), 1/sqrt(fan_in)) init.
    k1, k2, k3, k4 = jax.random.split(key, 4)
    bound1 = 1.0 / jnp.sqrt(dim)
    bound2 = 1.0 / jnp.sqrt(ff_dim)
    # Stored pre-transposed: (in, out) so the kernel computes x @ W.
    w1 = jax.random.uniform(k1, (dim, ff_dim), dtype, -bound1, bound1)
    b1 = jax.random.uniform(k2, (ff_dim,), dtype, -bound1, bound1)
    w2 = jax.random.uniform(k3, (ff_dim, dim), dtype, -bound2, bound2)
    b2 = jax.random.uniform(k4, (dim,), dtype, -bound2, bound2)
    return w1, b1, w2, b2


def _reference(x, w1, b1, w2, b2):
    hp = jax.lax.Precision.HIGHEST
    h = jnp.maximum(jnp.dot(x, w1, precision=hp) + b1, 0.0)
    return jnp.dot(h, w2, precision=hp) + b2


if __name__ == "__main__":
    key = jax.random.PRNGKey(0)
    kx, kp, kx2, kp2 = jax.random.split(key, 4)

    # --- Case 1: small module-consistent shapes (single ff-tile path). ---
    batch, seq, dim, ff_dim = 2, 8, 32, 64
    x = jax.random.normal(kx, (batch, seq, dim), jnp.float32)
    w1, b1, w2, b2 = init_params(kp, dim, ff_dim)

    out = jax.block_until_ready(positional_feed_forward(x, w1, b1, w2, b2))
    ref = _reference(x, w1, b1, w2, b2)
    assert out.shape == (batch, seq, dim)
    assert jnp.allclose(out, ref, atol=5e-3, rtol=5e-3), "case1 mismatch"

    # --- Case 2: ragged row tiling (M=192, tm=128) + ff reduction axis. ---
    b2_, s2_, d2_, f2_ = 2, 96, 256, 512
    x_big = jax.random.normal(kx2, (b2_, s2_, d2_), jnp.float32)
    pw1, pb1, pw2, pb2 = init_params(kp2, d2_, f2_)

    out_big = jax.block_until_ready(
        positional_feed_forward(x_big, pw1, pb1, pw2, pb2, tm=128, tf=256))
    ref_big = _reference(x_big, pw1, pb1, pw2, pb2)
    assert out_big.shape == (b2_, s2_, d2_)
    assert jnp.allclose(out_big, ref_big, atol=5e-3, rtol=5e-3), "case2 mismatch"

    # --- Case 3: bf16 MXU compute path (weights cast once, x cast in-kernel).
    out_bf16 = jax.block_until_ready(
        positional_feed_forward(x_big, pw1, pb1, pw2, pb2, tm=128, tf=256,
                                compute_dtype=jnp.bfloat16))
    assert out_bf16.shape == (b2_, s2_, d2_)
    assert jnp.allclose(out_bf16, ref_big, atol=1e-1, rtol=1e-1), "case3 mismatch"

    print("KERNEL_OK")
</pallas_src>

<mosaic_0001>
module attributes {stable_mosaic.version = 11 : i64} {
  func.func @_single_tile_kernel(%arg0: i32, %arg1: memref<8x32xf32, #tpu.memory_space<vmem>>, %arg2: memref<32x64xf32, #tpu.memory_space<vmem>>, %arg3: memref<1x64xf32, #tpu.memory_space<vmem>>, %arg4: memref<64x32xf32, #tpu.memory_space<vmem>>, %arg5: memref<1x32xf32, #tpu.memory_space<vmem>>, %arg6: memref<8x32xf32, #tpu.memory_space<vmem>>) attributes {dimension_semantics = [#tpu.dimension_semantics<parallel>], iteration_bounds = array<i64: 2>, scalar_prefetch = 0 : i64, scratch_operands = 0 : i64, tpu.core_type = #tpu.core_type<tc>, window_params = [{transform_indices = @transform_0, window_bounds = array<i64: 8, 32>}, {pipeline_mode = #tpu.pipeline_mode<synchronous>, transform_indices = @transform_1, window_bounds = array<i64: 32, 64>}, {pipeline_mode = #tpu.pipeline_mode<synchronous>, transform_indices = @transform_2, window_bounds = array<i64: 1, 64>}, {pipeline_mode = #tpu.pipeline_mode<synchronous>, transform_indices = @transform_3, window_bounds = array<i64: 64, 32>}, {pipeline_mode = #tpu.pipeline_mode<synchronous>, transform_indices = @transform_4, window_bounds = array<i64: 1, 32>}, {transform_indices = @transform_5, window_bounds = array<i64: 8, 32>}]} {
    %c0 = arith.constant 0 : index
    %c0_0 = arith.constant 0 : index
    %0 = vector.load %arg1[%c0, %c0_0] : memref<8x32xf32, #tpu.memory_space<vmem>>, vector<8x32xf32>
    %c0_1 = arith.constant 0 : index
    %c0_2 = arith.constant 0 : index
    %1 = vector.load %arg2[%c0_1, %c0_2] : memref<32x64xf32, #tpu.memory_space<vmem>>, vector<32x64xf32>
    %cst = arith.constant dense<0.000000e+00> : vector<8x64xf32>
    %2 = tpu.matmul %0, %1, %cst {dimension_numbers = #tpu.dot_dimension_numbers<[1], [0], [0], [1], [0, 0, 1, 1], [], []>} : vector<8x32xf32>, vector<32x64xf32>, vector<8x64xf32> -> vector<8x64xf32>
    %c0_3 = arith.constant 0 : index
    %c0_4 = arith.constant 0 : index
    %3 = vector.load %arg3[%c0_3, %c0_4] : memref<1x64xf32, #tpu.memory_space<vmem>>, vector<1x64xf32>
    %4 = vector.broadcast %3 : vector<1x64xf32> to vector<8x64xf32>
    %5 = arith.addf %2, %4 : vector<8x64xf32>
    %cst_5 = arith.constant 0.000000e+00 : f32
    %6 = vector.broadcast %cst_5 : f32 to vector<8x64xf32>
    %7 = arith.maximumf %5, %6 : vector<8x64xf32>
    %c0_6 = arith.constant 0 : index
    %c0_7 = arith.constant 0 : index
    %8 = vector.load %arg4[%c0_6, %c0_7] : memref<64x32xf32, #tpu.memory_space<vmem>>, vector<64x32xf32>
    %cst_8 = arith.constant dense<0.000000e+00> : vector<8x32xf32>
    %9 = tpu.matmul %7, %8, %cst_8 {dimension_numbers = #tpu.dot_dimension_numbers<[1], [0], [0], [1], [0, 0, 1, 1], [], []>} : vector<8x64xf32>, vector<64x32xf32>, vector<8x32xf32> -> vector<8x32xf32>
    %c0_9 = arith.constant 0 : index
    %c0_10 = arith.constant 0 : index
    %10 = vector.load %arg5[%c0_9, %c0_10] : memref<1x32xf32, #tpu.memory_space<vmem>>, vector<1x32xf32>
    %11 = vector.broadcast %10 : vector<1x32xf32> to vector<8x32xf32>
    %12 = arith.addf %9, %11 : vector<8x32xf32>
    %c0_11 = arith.constant 0 : index
    %c0_12 = arith.constant 0 : index
    %13 = vector.load %arg6[%c0_11, %c0_12] : memref<8x32xf32, #tpu.memory_space<vmem>>, vector<8x32xf32>
    tpu.vector_store %arg6[%c0_11, %c0_12], %12 {strides = array<i32>} : memref<8x32xf32, #tpu.memory_space<vmem>>, vector<8x32xf32>,
    return
  }
  func.func @transform_0(%arg0: i32) -> (i32, i32) {
    %c0_i32 = arith.constant 0 : i32
    %c0_i32_0 = arith.constant 0 : i32
    return %arg0, %c0_i32 : i32, i32
  }
  func.func @transform_1(%arg0: i32) -> (i32, i32) {
    %c0_i32 = arith.constant 0 : i32
    %c0_i32_0 = arith.constant 0 : i32
    %c0_i32_1 = arith.constant 0 : i32
    return %c0_i32, %c0_i32_0 : i32, i32
  }
  func.func @transform_2(%arg0: i32) -> (i32, i32) {
    %c0_i32 = arith.constant 0 : i32
    %c0_i32_0 = arith.constant 0 : i32
    %c0_i32_1 = arith.constant 0 : i32
    return %c0_i32, %c0_i32_0 : i32, i32
  }
  func.func @transform_3(%arg0: i32) -> (i32, i32) {
    %c0_i32 = arith.constant 0 : i32
    %c0_i32_0 = arith.constant 0 : i32
    %c0_i32_1 = arith.constant 0 : i32
    return %c0_i32, %c0_i32_0 : i32, i32
  }
  func.func @transform_4(%arg0: i32) -> (i32, i32) {
    %c0_i32 = arith.constant 0 : i32
    %c0_i32_0 = arith.constant 0 : i32
    %c0_i32_1 = arith.constant 0 : i32
    return %c0_i32, %c0_i32_0 : i32, i32
  }
  func.func @transform_5(%arg0: i32) -> (i32, i32) {
    %c0_i32 = arith.constant 0 : i32
    %c0_i32_0 = arith.constant 0 : i32
    return %arg0, %c0_i32 : i32, i32
  }
}

</mosaic_0001>

<bundles_post_ra>
// kernel: tpu_custom_call.1
= control target key start
LH: loop header
LB: loop body
LE: loop exit
PB: predicated region body
PF: predicated region fallthrough
CT: control target
= control target key end

     0   :  { %10 = vsyncpa [#allocation3], 0  ;;  %s642_s0 = inlined_call_operand.vmem [shape: f32[16,32], index: 0, kind: input, shape index: {}]   ;;  %s643_s1 = inlined_call_operand.vmem [shape: f32[32,64], index: 1, kind: input, shape index: {}]   ;;  %s644_s2 = inlined_call_operand.vmem [shape: f32[1,64], index: 2, kind: input, shape index: {}]   ;;  %s645_s3 = inlined_call_operand.vmem [shape: f32[64,32], index: 3, kind: input, shape index: {}]   ;;  %s646_s4 = inlined_call_operand.vmem [shape: f32[1,32], index: 4, kind: input, shape index: {}]   ;;  %s647_s5 = inlined_call_operand.hbm [shape: f32[16,32], index: 5, kind: output, shape index: {}]  }
   0x1   :  { %12 = vsyncpa [#allocation3 + $0x1], 0  ;;  %s513_s18 = smov 0   ;;  %s515_s19 = smov 0  }
   0x2   :  { %s517_s20 = smov 0   ;;  %s519_s21 = smov 0  }
   0x3 LB: > { %s534_s22 = sadd.s32 4294967295, %s481_s21   ;;  %s366_s23 = sadd.s32 4294967294, %s481_s21   ;;  %s481_s21 = sphi %s519_s21, %s653_s21   ;;  %s477_s20 = sphi %s517_s20, %s652_s20   ;;  %s473_s19 = sphi %s515_s19, %s651_s19   ;;  %s469_s18 = sphi %s513_s18, %s650_s18  }
   0x4   : > { %s538_s24 = sadd.s32 1, %s481_s21   ;;  %s135_s25 = sadd.s32 1, %s477_s20 }
   0x5   : > { %s132_s26 = ssub.s32 %s481_s21, %s538_s24  ;;  %p145_p0 = scmp.ne.s32.totalorder %s477_s20, %s473_s19 }
   0x6   : > { %p133_p1 = scmp.eq.s32.totalorder %s132_s26, 0  ;;  %p146_p2 = scmp.eq.s32.totalorder %s534_s22, 1 }
   0x7   : > { %p151_p3 = scmp.ne.s32.totalorder %s473_s19, %s469_s18  ;;  %p152_p4 = scmp.eq.s32.totalorder %s366_s23, 1 }
   0x8   : > { %s549_s27 = scalar_select %p133_p1, %s477_s20, %s135_s25  }
   0x9   : > { %p551_p5 = por %p146_p2, %p145_p0  ;;  %p555_p6 = por %p152_p4, %p151_p3 }
   0xa   : > { %p369_p7 = scmp.ge.s32.totalorder %s481_s21, 1  ;;  %p189_p8 = scmp.lt.s32.totalorder %s481_s21, 3 }
   0xc   : > { %p190_p9 = pnand %p369_p7, %p189_p8 }
   0xd   : > { %p216_p10 = scmp.lt.s32.totalorder (!%p190_p9), %s534_s22, 1  ;;  %s375_s6 = sshll.u32 (!%p190_p9), %s534_s22, 3 }
   0xe   : > { %193 = sbr.rel (%p190_p9) target bundleno = 288 (0x120), region = 40  ;;  %s302_s9 = scalar_lea.hbm (!%p190_p9), %s647_s5, %s375_s6 }
   0xf   : > { %s306_s14 = sshll.u32 (!%p190_p9), %s302_s9, 4  ;;  %s439_s25 = scalar_lea.hbm (!%p190_p9), %s647_s5, 16  ;;  %s307_s14 = int_to_ptr.hbm [resolvable:$true] %s306_s14 }
  0x13   : > { %v224_v0 = vld [vmem:[%s643_s1 + $0x18] sm:$0xff]  ;;  %v223_v1 = vld [vmem:[%s643_s1 + $0x10] sm:$0xff]  ;;  %v222_v4 = vld [vmem:[%s643_s1 + $0x8] sm:$0xff]  ;;  %s217_s15 = scalar_select %p216_p10, %s534_s22, 1  ;;  %vm229_vm0 = vcmask 261120   ;;  %vm266_vm1 = vcmask 523264  }
  0x14   : > { %245 = vmatpush.msra.mxu0 %v224_v0  ;;  %v261_v2 = vld [vmem:[%s645_s3 + $0x38] sm:$0xff]  ;;  %v260_v3 = vld [vmem:[%s645_s3 + $0x30] sm:$0xff]  ;;  %v259_v5 = vld [vmem:[%s645_s3 + $0x28] sm:$0xff]  ;;  %s433_s22 = sshra.s32 %s307_s14, 4  ;;  %s434_s22 = int_to_ptr.hbm [resolvable:$true] %s433_s22 }
  0x15   : > { %278 = vmatpush.msra.mxu1 %v261_v2  ;;  %v221_v6 = vld [vmem:[%s643_s1] sm:$0xff]  ;;  %s371_s26 = sshll.u32 %s217_s15, 3  ;;  %v257_v9 = vld [vmem:[%s645_s3 + $0x18] sm:$0xff]  ;;  %v256_v10 = vld [vmem:[%s645_s3 + $0x10] sm:$0xff]  ;;  %s435_s16 = scalar_lea.hbm %s434_s22, 8 }
  0x16   : > { %246 = vmatpush.msra.mxu0 %v223_v1  ;;  %s219_s7 = scalar_lea.vmem %s642_s0, %s371_s26  ;;  %v258_v7 = vld [vmem:[%s645_s3 + $0x20] sm:$0xff]  ;;  %v255_v11 = vld [vmem:[%s645_s3 + $0x8] sm:$0xff]  ;;  %s213_s26 = sand.u32 1, %s473_s19  }
  0x17   : > { %279 = vmatpush.msra.mxu1 %v260_v3  ;;  %v220_v8 = vld [vmem:[%s219_s7] sm:$0xff]  ;;  %s370_s30 = sshll.u32 %s213_s26, 3  ;;  %s292_s15 = scalar_lea.sflag [#allocation3], %s213_s26 }
  0x18   : > { %247 = vmatpush.msra.mxu0 %v222_v4  ;;  %v254_v12 = vld [vmem:[%s645_s3] sm:$0xff]  ;;  %s215_s12 = scalar_lea.vmem [#allocation2], %s370_s30  ;;  %p436_p11 = scmp.ne.s32.totalorder %s434_s22, %s435_s16 }
  0x19   : > { %280 = vmatpush.msra.mxu1 %v259_v5  ;;  %v417_v13 = vld [vmem:[%s644_s2] ss:$0 sm:$0xff]  ;;  %s304_s13 = sshll.u32 %s215_s12, 4  ;;  %p440_p0 = scmp.lt.s32.totalorder %s434_s22, %s647_s5  ;;  %s305_s13 = int_to_ptr.vmem [resolvable:$true] %s304_s13 }
  0x1a   : > { %248 = vmatpush.msra.mxu0 %v221_v6  ;;  %v418_v17 = vld [vmem:[%s646_s4] ss:$0 sm:$0xff]  ;;  %p437_p12 = pnand %p436_p11, %p551_p5  ;;  %p441_p1 = scmp.lt.s32.totalorder %s439_s25, %s435_s16 }
  0x1b   : > { %372 = vmatmul.msk.f32.vlgmr.msra.gmra.mxu0 %vm229_vm0, %v220_v8  ;;  %281 = vmatpush.msra.mxu1 %v258_v7 }
  0x1c   : > { %p438_p13 = pneg %p437_p12  ;;  %p442_p2 = por %p441_p1, %p440_p0 }
  0x1d   : > { %282 = vmatpush.msra.mxu1 %v257_v9 }
  0x1e   : > { %p443_p3 = pnand %p442_p2, %p438_p13 }
  0x1f   : > { %283 = vmatpush.msra.mxu1 %v256_v10 }
  0x21   : > { %284 = vmatpush.msra.mxu1 %v255_v11 }
  0x23   : > { %285 = vmatpush.msra.mxu1 %v254_v12 }
  0x98   : > { %v250_v14 = vpop.f32.mrf.mxu0 }
  0x99   : > { %v251_v15 = vadd.f32 %v417_v13, %v250_v14 }
  0x9b   : > { %v253_v16 = vmax.f32 %v251_v15, 0.0 }
  0x9d   : > { %373 = vmatmul.msk.f32.vlgmr.msra.gmra.mxu1 %vm266_vm1, %v253_v16 }
 0x11a   : > { %v287_v18 = vpop.f32.mrf.mxu1 }
 0x11b   : > { %v288_v19 = vadd.f32 %v418_v17, %v287_v18 }
 0x11d   : > { %290 = vst.msk [vmem:[%s215_s12] sm:$0xff] %vm229_vm0, %v288_v19 }
 0x11e   : > { %446 = shalt.err (!%p443_p3)
}
 0x11f   : > { %378 = dma.vmem_to_hbm [thread:$0]  (%p551_p5), %s305_s13, 128, %s307_s14, %s292_s15  }
 0x120 PF: > { %p384_p4 = scmp.ge.s32.totalorder %s481_s21, 2  ;;  %s318_s26 = sand.u32 1, %s469_s18  }
 0x121   : > { %s319_s7 = scalar_lea.sflag [#allocation3], %s318_s26 }
 0x122   : > { %p381_p7 = pnand %p384_p4, %p555_p6 }
 0x124   : > { %p382_p8 = pneg %p381_p7 }
 0x126   : > { %464 = dma.done.wait (%p382_p8), %s319_s7, 128  }
 0x127   : > { %466 = vsyncadd (%p382_p8), %s319_s7, 4294967168  ;;  %p15_p9 = scmp.ge.s32.totalorder %s538_s24, 4   ;;  %s650_s18 = smov %s473_s19 }
 0x128   : > { %s651_s19 = smov %s477_s20  ;;  %s652_s20 = smov %s549_s27 }
 0x129   : > { %s653_s21 = smov %s538_s24  ;;  %17 = sbr.rel (!%p15_p9) target bundleno = 3 (0x3), region = 75 }
 0x12e   :  { %325 = vsyncpa [#allocation3], 1 }
 0x12f   :  { %327 = vsyncpa [#allocation3 + $0x1], 1 }

</bundles_post_ra>
